<compile_context>
chip_gen: v5e
topology: v5e:2x2
jax: 0.10.0
libtpu: 0.0.40
codegen_flags: <defaults>
</compile_context>

<pallas_src>
import functools

import jax
import jax.numpy as jnp
from jax.experimental import pallas as pl
from jax.experimental.pallas import tpu as pltpu


def _conv_bn_lrelu_kernel(x_ref, w_ref, gamma_ref, beta_ref, mask_ref, o_ref,
                          *, width, kh_size, kw_size, eps, slope):
    """Fused valid-conv + batchnorm(batch stats) + leaky-relu (single block).

    x_ref     : (Cpad, N*H*W)        channel-major, pixels in lanes (Cpad tile-aligned)
    w_ref     : (Cout, KH*KW*Cpad)   rows ordered as tap*Cpad + cin (matches im2col)
    gamma/beta: (Cout, 1)            f32
    mask_ref  : (1, N*H*W)           1/count at valid output pixels, 0 elsewhere
    o_ref     : (Cout, N*H*W)        invalid pixels hold garbage; wrapper crops
    """
    cpad, nhw = x_ref.shape
    x = x_ref[...]

    # im2col as a value via XLU lane rotations: slab t holds x[:, i + kh*W + kw]
    # at lane i.  Wrapped / cross-image lanes only land at invalid output
    # pixels, which are excluded from BN stats by mask_ref and cropped later.
    slabs = []
    for kh in range(kh_size):
        for kw in range(kw_size):
            s = kh * width + kw
            slabs.append(x if s == 0 else pltpu.roll(x, shift=nhw - s, axis=1))
    xcol = jnp.concatenate(slabs, axis=0)          # (KH*KW*Cpad, N*H*W)

    # Single MXU matmul with f32 accumulation: (Cout, K) @ (K, pixels).
    acc = jnp.dot(w_ref[...], xcol,
                  preferred_element_type=jnp.float32)   # (Cout, N*H*W) f32

    # BatchNorm2d, training mode: biased batch stats over valid pixels only.
    # mask already carries the 1/count factor; shifted (two-pass) variance
    # avoids the E[y^2]-E[y]^2 cancellation issue.
    maskf = mask_ref[...]
    mean = jnp.sum(acc * maskf, axis=1, keepdims=True)            # (Cout, 1)
    centered = acc - mean
    var = jnp.sum(centered * centered * maskf, axis=1, keepdims=True)
    scale = gamma_ref[...] * jax.lax.rsqrt(var + eps)             # (Cout, 1)

    y = centered * scale + beta_ref[...]                          # folded affine
    o_ref[...] = jnp.maximum(y, slope * y)                        # LeakyReLU(0.2)


def _conv_block_forward_impl(x_nchw, w_oihw, bias, gamma, beta, *,
                             eps=1e-5, slope=0.2, matmul_dtype=jnp.bfloat16):
    """PyTorch-semantics ConvBlock forward. x: NCHW, w: OIHW. Returns NCHW."""
    n, cin, h, w = x_nchw.shape
    cout, cin_w, kh, kw = w_oihw.shape
    assert cin == cin_w
    ho, wo = h - kh + 1, w - kw + 1
    nhw = n * h * w

    # Conv bias is exactly removed by training-mode BN mean subtraction.
    del bias

    # Pad Cin to the sublane packing of the matmul dtype (8 for 4-byte,
    # 16 for 2-byte) so every im2col slab is tile-aligned.
    itemsize = jnp.dtype(matmul_dtype).itemsize
    sub = 8 * (4 // itemsize)
    cpad = ((cin + sub - 1) // sub) * sub

    # Channel-major, pixels-in-lanes input layout (+ zero channel padding).
    x_cf = jnp.transpose(x_nchw, (1, 0, 2, 3)).reshape(cin, nhw)
    x_cf = jnp.pad(x_cf, ((0, cpad - cin), (0, 0))).astype(matmul_dtype)

    # Weights flattened to (Cout, KH*KW*Cpad), row order tap*Cpad + c.
    w2 = jnp.transpose(w_oihw, (0, 2, 3, 1))                      # (Cout,KH,KW,Cin)
    w2 = jnp.pad(w2, ((0, 0), (0, 0), (0, 0), (0, cpad - cin)))
    w2 = w2.reshape(cout, kh * kw * cpad).astype(matmul_dtype)

    g2 = gamma.reshape(cout, 1).astype(jnp.float32)
    b2 = beta.reshape(cout, 1).astype(jnp.float32)

    # Valid-output-pixel mask, pre-scaled by 1/count (folds the mean divisor).
    # Constant-folds under jit.
    valid = (jnp.arange(h)[:, None] < ho) & (jnp.arange(w)[None, :] < wo)
    maskf = (jnp.tile(valid.reshape(-1), (n,)).astype(jnp.float32)
             / float(n * ho * wo)).reshape(1, nhw)

    kernel = functools.partial(_conv_bn_lrelu_kernel, width=w,
                               kh_size=kh, kw_size=kw, eps=eps, slope=slope)

    out_cf = pl.pallas_call(
        kernel,
        out_shape=jax.ShapeDtypeStruct((cout, nhw), jnp.float32),
        in_specs=[pl.BlockSpec(memory_space=pltpu.MemorySpace.VMEM)] * 5,
        out_specs=pl.BlockSpec(memory_space=pltpu.MemorySpace.VMEM),
    )(x_cf, w2, g2, b2, maskf)

    # (Cout, N*H*W) -> (Cout, N, H, W) -> crop valid window -> NCHW.
    out = out_cf.reshape(cout, n, h, w)[:, :, :ho, :wo]
    return jnp.transpose(out, (1, 0, 2, 3))


# jit the whole wrapper so the layout glue fuses into one dispatch.
conv_block_forward = jax.jit(_conv_block_forward_impl,
                             static_argnames=("eps", "slope", "matmul_dtype"))


def reference_forward(x, w, b, gamma, beta, *, eps=1e-5, slope=0.2):
    """Pure-JAX reference (NCHW) for correctness checking."""
    y = jax.lax.conv_general_dilated(
        x, w, window_strides=(1, 1), padding='VALID',
        dimension_numbers=('NCHW', 'OIHW', 'NCHW'))
    y = y + b.reshape(1, -1, 1, 1)
    mean = jnp.mean(y, axis=(0, 2, 3), keepdims=True)
    var = jnp.mean((y - mean) ** 2, axis=(0, 2, 3), keepdims=True)
    y = (y - mean) * jax.lax.rsqrt(var + eps)
    y = y * gamma.reshape(1, -1, 1, 1) + beta.reshape(1, -1, 1, 1)
    return jnp.where(y >= 0, y, slope * y)


if __name__ == "__main__":
    # Consistent with ConvBlock(in_channels=4, out_channels=8, kernel_size=3,
    # norm_layer='bn')
    N, Cin, H, W = 2, 4, 16, 16
    Cout, K = 8, 3

    key = jax.random.PRNGKey(0)
    kx, kwt, kg = jax.random.split(key, 3)

    x = jax.random.normal(kx, (N, Cin, H, W), dtype=jnp.float32)

    # Deterministic param init mirroring the module's __init__:
    #   conv.weight ~ N(0, 0.02), conv.bias = 0
    #   bn.weight   ~ N(1, 0.02), bn.bias  = 0
    conv_w = 0.02 * jax.random.normal(kwt, (Cout, Cin, K, K), dtype=jnp.float32)
    conv_b = jnp.zeros((Cout,), dtype=jnp.float32)
    bn_gamma = 1.0 + 0.02 * jax.random.normal(kg, (Cout,), dtype=jnp.float32)
    bn_beta = jnp.zeros((Cout,), dtype=jnp.float32)

    ref = reference_forward(x, conv_w, conv_b, bn_gamma, bn_beta)

    # f32 MXU-operand path: bit-tight against the f32 reference.
    out_f32 = conv_block_forward(x, conv_w, conv_b, bn_gamma, bn_beta,
                                 matmul_dtype=jnp.float32)
    out_f32 = jax.block_until_ready(out_f32)
    assert out_f32.shape == (N, Cout, H - K + 1, W - K + 1), out_f32.shape
    assert jnp.allclose(out_f32, ref, rtol=1e-4, atol=1e-4), "f32 path mismatch"

    # Default bf16-operand path (v6e/v7x MXU-native; f32 accumulation):
    # loosened tolerance for bf16 operand rounding.
    out_bf16 = conv_block_forward(x, conv_w, conv_b, bn_gamma, bn_beta)
    out_bf16 = jax.block_until_ready(out_bf16)
    assert out_bf16.shape == (N, Cout, H - K + 1, W - K + 1), out_bf16.shape
    assert jnp.allclose(out_bf16, ref, rtol=5e-2, atol=5e-2), "bf16 path mismatch"

    print("KERNEL_OK")
</pallas_src>

<mosaic_0001>
module attributes {stable_mosaic.version = 11 : i64} {
  func.func @_conv_bn_lrelu_kernel(%arg0: memref<8x512xf32, #tpu.memory_space<vmem>>, %arg1: memref<8x72xf32, #tpu.memory_space<vmem>>, %arg2: memref<8x1xf32, #tpu.memory_space<vmem>>, %arg3: memref<8x1xf32, #tpu.memory_space<vmem>>, %arg4: memref<1x512xf32, #tpu.memory_space<vmem>>, %arg5: memref<8x512xf32, #tpu.memory_space<vmem>>) attributes {dimension_semantics = [], scalar_prefetch = 0 : i64, scratch_operands = 0 : i64, tpu.core_type = #tpu.core_type<tc>} {
    %c0 = arith.constant 0 : index
    %c0_0 = arith.constant 0 : index
    %0 = vector.load %arg0[%c0, %c0_0] : memref<8x512xf32, #tpu.memory_space<vmem>>, vector<8x512xf32>
    %c511_i32 = arith.constant 511 : i32
    %1 = tpu.dynamic_rotate %0 by %c511_i32 dim 1 : vector<8x512xf32>, i32 -> vector<8x512xf32>
    %c510_i32 = arith.constant 510 : i32
    %2 = tpu.dynamic_rotate %0 by %c510_i32 dim 1 : vector<8x512xf32>, i32 -> vector<8x512xf32>
    %c496_i32 = arith.constant 496 : i32
    %3 = tpu.dynamic_rotate %0 by %c496_i32 dim 1 : vector<8x512xf32>, i32 -> vector<8x512xf32>
    %c495_i32 = arith.constant 495 : i32
    %4 = tpu.dynamic_rotate %0 by %c495_i32 dim 1 : vector<8x512xf32>, i32 -> vector<8x512xf32>
    %c494_i32 = arith.constant 494 : i32
    %5 = tpu.dynamic_rotate %0 by %c494_i32 dim 1 : vector<8x512xf32>, i32 -> vector<8x512xf32>
    %c480_i32 = arith.constant 480 : i32
    %6 = tpu.dynamic_rotate %0 by %c480_i32 dim 1 : vector<8x512xf32>, i32 -> vector<8x512xf32>
    %c479_i32 = arith.constant 479 : i32
    %7 = tpu.dynamic_rotate %0 by %c479_i32 dim 1 : vector<8x512xf32>, i32 -> vector<8x512xf32>
    %c478_i32 = arith.constant 478 : i32
    %8 = tpu.dynamic_rotate %0 by %c478_i32 dim 1 : vector<8x512xf32>, i32 -> vector<8x512xf32>
    %9 = tpu.concatenate %0, %1, %2, %3, %4, %5, %6, %7, %8 in 0 : vector<8x512xf32>, vector<8x512xf32>, vector<8x512xf32>, vector<8x512xf32>, vector<8x512xf32>, vector<8x512xf32>, vector<8x512xf32>, vector<8x512xf32>, vector<8x512xf32> -> vector<72x512xf32>
    %c0_1 = arith.constant 0 : index
    %c0_2 = arith.constant 0 : index
    %10 = vector.load %arg1[%c0_1, %c0_2] : memref<8x72xf32, #tpu.memory_space<vmem>>, vector<8x72xf32>
    %cst = arith.constant dense<0.000000e+00> : vector<8x512xf32>
    %11 = tpu.matmul %10, %9, %cst {dimension_numbers = #tpu.dot_dimension_numbers<[1], [0], [0], [1], [0, 0, 1, 1], [], []>} : vector<8x72xf32>, vector<72x512xf32>, vector<8x512xf32> -> vector<8x512xf32>
    %c0_3 = arith.constant 0 : index
    %c0_4 = arith.constant 0 : index
    %12 = vector.load %arg4[%c0_3, %c0_4] : memref<1x512xf32, #tpu.memory_space<vmem>>, vector<1x512xf32>
    %13 = vector.broadcast %12 : vector<1x512xf32> to vector<8x512xf32>
    %14 = arith.mulf %11, %13 : vector<8x512xf32>
    %cst_5 = arith.constant dense<0.000000e+00> : vector<8xf32>
    %15 = vector.multi_reduction <add>, %14, %cst_5 [1] : vector<8x512xf32> to vector<8xf32>
    %16 = vector.shape_cast %15 : vector<8xf32> to vector<8x1xf32>
    %17 = vector.broadcast %16 : vector<8x1xf32> to vector<8x512xf32>
    %18 = arith.subf %11, %17 : vector<8x512xf32>
    %19 = arith.mulf %18, %18 : vector<8x512xf32>
    %20 = vector.broadcast %12 : vector<1x512xf32> to vector<8x512xf32>
    %21 = arith.mulf %19, %20 : vector<8x512xf32>
    %cst_6 = arith.constant dense<0.000000e+00> : vector<8xf32>
    %22 = vector.multi_reduction <add>, %21, %cst_6 [1] : vector<8x512xf32> to vector<8xf32>
    %23 = vector.shape_cast %22 : vector<8xf32> to vector<8x1xf32>
    %c0_7 = arith.constant 0 : index
    %c0_8 = arith.constant 0 : index
    %24 = vector.load %arg2[%c0_7, %c0_8] : memref<8x1xf32, #tpu.memory_space<vmem>>, vector<8x1xf32>
    %cst_9 = arith.constant 9.99999974E-6 : f32
    %25 = vector.broadcast %cst_9 : f32 to vector<8x1xf32>
    %26 = arith.addf %23, %25 : vector<8x1xf32>
    %27 = math.rsqrt %26 : vector<8x1xf32>
    %28 = arith.mulf %24, %27 : vector<8x1xf32>
    %29 = vector.broadcast %28 : vector<8x1xf32> to vector<8x512xf32>
    %30 = arith.mulf %18, %29 : vector<8x512xf32>
    %c0_10 = arith.constant 0 : index
    %c0_11 = arith.constant 0 : index
    %31 = vector.load %arg3[%c0_10, %c0_11] : memref<8x1xf32, #tpu.memory_space<vmem>>, vector<8x1xf32>
    %32 = vector.broadcast %31 : vector<8x1xf32> to vector<8x512xf32>
    %33 = arith.addf %30, %32 : vector<8x512xf32>
    %cst_12 = arith.constant 2.000000e-01 : f32
    %34 = vector.broadcast %cst_12 : f32 to vector<8x512xf32>
    %35 = arith.mulf %34, %33 : vector<8x512xf32>
    %36 = arith.maximumf %33, %35 : vector<8x512xf32>
    %c0_13 = arith.constant 0 : index
    %c0_14 = arith.constant 0 : index
    %37 = vector.load %arg5[%c0_13, %c0_14] : memref<8x512xf32, #tpu.memory_space<vmem>>, vector<8x512xf32>
    tpu.vector_store %arg5[%c0_13, %c0_14], %36 {strides = array<i32>} : memref<8x512xf32, #tpu.memory_space<vmem>>, vector<8x512xf32>,
    return
  }
}

</mosaic_0001>

<bundles_post_ra>
// kernel: _conv_block_forward_impl.1
= control target key start
LH: loop header
LB: loop body
LE: loop exit
PB: predicated region body
PF: predicated region fallthrough
CT: control target
= control target key end

     0   :  { %s395_s26 = smov 94   ;;  %s396_s27 = smov 95   ;;  %v32_v7 = vlaneseq  ;;  %vm131_vm8 = vcmask 588800   ;;  %s560_s0 = inlined_call_operand.vmem [shape: f32[8,512], index: 0, kind: input, shape index: {}]   ;;  %s561_s1 = inlined_call_operand.vmem [shape: f32[8,72], index: 1, kind: input, shape index: {}]   ;;  %s562_s4 = inlined_call_operand.vmem [shape: f32[1,512], index: 4, kind: input, shape index: {}]   ;;  %s563_s2 = inlined_call_operand.vmem [shape: f32[8,1], index: 2, kind: input, shape index: {}]   ;;  %s564_s3 = inlined_call_operand.vmem [shape: f32[8,1], index: 3, kind: input, shape index: {}]   ;;  %s565_s5 = inlined_call_operand.vmem [shape: f32[8,512], index: 5, kind: output, shape index: {}]  }
   0x1   :  { %v437_v0 = vld [vmem:[%s560_s0 + $0x10] sm:$0xff]  ;;  %v442_v1 = vld [vmem:[%s560_s0 + $0x18] sm:$0xff]  ;;  %v447_v2 = vld [vmem:[%s560_s0] sm:$0xff]  ;;  %s397_s28 = smov 96   ;;  %s398_s29 = smov 110  }
   0x2   :  { %v312_v3 = vpack.i.bf16 %v442_v1, %v437_v0  ;;  %v454_v4 = vld [vmem:[%s560_s0 + $0x8] sm:$0xff]  ;;  %s399_s30 = smov 111   ;;  %s400_s6 = smov 112   ;;  %v458_v8 = vand.u32 127, %v32_v7 }
   0x3   :  { %v322_v5 = vpack.i.bf16 %v454_v4, %v447_v2  ;;  %s401_s0 = smov 126   ;;  %s402_s7 = smov 127  }
   0x4   :  { %313 = vrot.lane.b32.xlu0 %v312_v3, %s395_s26  ;;  %vm125_vm0 = vcmp.lt.s32.totalorder %v458_v8, 94  ;;  %vm112_vm1 = vcmp.lt.s32.totalorder %v458_v8, 95  ;;  %vm99_vm2 = vcmp.lt.s32.totalorder %v458_v8, 96  ;;  %vm86_vm3 = vcmp.lt.s32.totalorder %v458_v8, 110 }
   0x5   :  { %323 = vrot.lane.b32.xlu1 %v322_v5, %s395_s26  ;;  %333 = vrot.lane.b32.xlu2 %v322_v5, %s396_s27  ;;  %vm73_vm4 = vcmp.lt.s32.totalorder %v458_v8, 111  ;;  %vm60_vm5 = vcmp.lt.s32.totalorder %v458_v8, 112  ;;  %vm47_vm6 = vcmp.lt.s32.totalorder %v458_v8, 126  ;;  %vm34_vm7 = vcmp.lt.s32.totalorder %v458_v8, 127 }
   0xc   :  { %318 = vrot.lane.b32.xlu0 %v312_v3, %s396_s27 }
   0xd   :  { %328 = vrot.lane.b32.xlu1 %v312_v3, %s397_s28  ;;  %338 = vrot.lane.b32.xlu2 %v312_v3, %s398_s29 }
  0x14   :  { %343 = vrot.lane.b32.xlu0 %v322_v5, %s397_s28 }
  0x15   :  { %348 = vrot.lane.b32.xlu1 %v312_v3, %s399_s30  ;;  %353 = vrot.lane.b32.xlu2 %v322_v5, %s398_s29 }
  0x1c   :  { %358 = vrot.lane.b32.xlu0 %v312_v3, %s400_s6 }
  0x1d   :  { %363 = vrot.lane.b32.xlu1 %v322_v5, %s399_s30  ;;  %368 = vrot.lane.b32.xlu2 %v312_v3, %s401_s0 }
  0x24   :  { %373 = vrot.lane.b32.xlu0 %v322_v5, %s400_s6 }
  0x25   :  { %378 = vrot.lane.b32.xlu1 %v312_v3, %s402_s7  ;;  %383 = vrot.lane.b32.xlu2 %v322_v5, %s401_s0 }
  0x2c   :  { %388 = vrot.lane.b32.xlu0 %v322_v5, %s402_s7 }
  0x5f   :  { %v334_v6 = vpop.permute.xlu2 %333 }
  0x60   :  { %v336_v11 = vunpack.i.h.bf16 %v334_v6  ;;  %v335_v12 = vunpack.i.l.bf16 %v334_v6 }
  0x62   :  { %v115_v22 = vsel %vm112_vm1, %v335_v12, %v336_v11 }
  0x67   :  { %v461_v10 = vpop.permute.xlu2 %338 }
  0x68   :  { %v341_v24 = vunpack.i.h.bf16 %v461_v10  ;;  %v340_v25 = vunpack.i.l.bf16 %v461_v10 }
  0x6a   :  { %v87_v36 = vsel %vm86_vm3, %v340_v25, %v341_v24 }
  0x6f   :  { %v354_v31 = vpop.permute.xlu2 %353 }
  0x70   :  { %v356_v38 = vunpack.i.h.bf16 %v354_v31  ;;  %v355_v39 = vunpack.i.l.bf16 %v354_v31 }
  0x72   :  { %v89_v48 = vsel %vm86_vm3, %v355_v39, %v356_v38  ;;  %v88_v51 = vsel %vm86_vm3, %v356_v38, %v340_v25  ;;  %v90_v52 = vsel %vm86_vm3, %v341_v24, %v355_v39 }
  0x76   :  { %v314_v9 = vpop.permute.xlu0 %313 }
  0x77   :  { %v316_v13 = vunpack.i.h.bf16 %v314_v9  ;;  %v315_v14 = vunpack.i.l.bf16 %v314_v9  ;;  %v324_v15 = vpop.permute.xlu1 %323  ;;  %v369_v49 = vpop.permute.xlu2 %368 }
  0x78   :  { %v326_v16 = vunpack.i.h.bf16 %v324_v15  ;;  %v325_v17 = vunpack.i.l.bf16 %v324_v15  ;;  %v371_v53 = vunpack.i.h.bf16 %v369_v49  ;;  %v370_v54 = vunpack.i.l.bf16 %v369_v49 }
  0x79   :  { %v126_v18 = vsel %vm125_vm0, %v315_v14, %v316_v13 }
  0x7a   :  { %v127_v19 = vsel %vm125_vm0, %v326_v16, %v315_v14  ;;  %182 = vmatpush.msra.mxu2 %v126_v18  ;;  %v129_v20 = vsel %vm125_vm0, %v316_v13, %v325_v17  ;;  %v128_v21 = vsel %vm125_vm0, %v325_v17, %v326_v16  ;;  %v48_v62 = vsel %vm47_vm6, %v370_v54, %v371_v53 }
  0x7b   :  { %162 = vmatpush.msra.mxu1 %v127_v19  ;;  %202 = vmatpush.msra.mxu3 %v129_v20 }
  0x7c   :  { %142 = vmatpush.msra.mxu0 %v128_v21 }
  0x7e   :  { %v319_v23 = vpop.permute.xlu0 %318  ;;  %143 = vmatpush.msra.mxu0 %v115_v22  ;;  %v130_v22 = vld [vmem:[%s561_s1] sm:$0xff] }
  0x7f   :  { %v321_v26 = vunpack.i.h.bf16 %v319_v23  ;;  %v320_v27 = vunpack.i.l.bf16 %v319_v23  ;;  %v329_v28 = vpop.permute.xlu1 %328  ;;  %v384_v6 = vpop.permute.xlu2 %383 }
  0x80   :  { %v331_v29 = vunpack.i.h.bf16 %v329_v28  ;;  %v330_v30 = vunpack.i.l.bf16 %v329_v28  ;;  %v386_v9 = vunpack.i.h.bf16 %v384_v6  ;;  %v385_v10 = vunpack.i.l.bf16 %v384_v6  ;;  %v251_v6 = vld [vmem:[%s563_s2] sm:$0xff] }
  0x81   :  { %v114_v32 = vsel %vm112_vm1, %v336_v11, %v320_v27  ;;  %v113_v33 = vsel %vm112_vm1, %v320_v27, %v321_v26  ;;  %v116_v34 = vsel %vm112_vm1, %v321_v26, %v335_v12 }
  0x82   :  { %163 = vmatpush.msra.mxu1 %v114_v32  ;;  %183 = vmatpush.msra.mxu2 %v113_v33  ;;  %v100_v35 = vsel %vm99_vm2, %v330_v30, %v331_v29  ;;  %v50_v19 = vsel %vm47_vm6, %v385_v10, %v386_v9  ;;  %v49_v21 = vsel %vm47_vm6, %v386_v9, %v370_v54 }
  0x83   :  { %203 = vmatpush.msra.mxu3 %v116_v34  ;;  %v51_v23 = vsel %vm47_vm6, %v371_v53, %v385_v10  ;;  %v273_v10 = vld [vmem:[%s564_s3] sm:$0xff] }
  0x84   :  { %184 = vmatpush.msra.mxu2 %v100_v35 }
  0x86   :  { %v344_v37 = vpop.permute.xlu0 %343  ;;  %185 = vmatpush.msra.mxu2 %v87_v36 }
  0x87   :  { %v346_v40 = vunpack.i.h.bf16 %v344_v37  ;;  %v345_v41 = vunpack.i.l.bf16 %v344_v37  ;;  %v349_v42 = vpop.permute.xlu1 %348 }
  0x88   :  { %v351_v43 = vunpack.i.h.bf16 %v349_v42  ;;  %v350_v44 = vunpack.i.l.bf16 %v349_v42 }
  0x89   :  { %v102_v45 = vsel %vm99_vm2, %v345_v41, %v346_v40  ;;  %v101_v46 = vsel %vm99_vm2, %v346_v40, %v330_v30  ;;  %v103_v47 = vsel %vm99_vm2, %v331_v29, %v345_v41 }
  0x8a   :  { %144 = vmatpush.msra.mxu0 %v102_v45  ;;  %164 = vmatpush.msra.mxu1 %v101_v46  ;;  %v74_v50 = vsel %vm73_vm4, %v350_v44, %v351_v43 }
  0x8b   :  { %204 = vmatpush.msra.mxu3 %v103_v47  ;;  %186 = vmatpush.msra.mxu2 %v74_v50 }
  0x8c   :  { %165 = vmatpush.msra.mxu1 %v88_v51  ;;  %145 = vmatpush.msra.mxu0 %v89_v48 }
  0x8d   :  { %205 = vmatpush.msra.mxu3 %v90_v52 }
  0x8e   :  { %v359_v55 = vpop.permute.xlu0 %358 }
  0x8f   :  { %v361_v56 = vunpack.i.h.bf16 %v359_v55  ;;  %v360_v57 = vunpack.i.l.bf16 %v359_v55  ;;  %v364_v58 = vpop.permute.xlu1 %363 }
  0x90   :  { %v366_v59 = vunpack.i.h.bf16 %v364_v58  ;;  %v365_v60 = vunpack.i.l.bf16 %v364_v58 }
  0x91   :  { %v61_v61 = vsel %vm60_vm5, %v360_v57, %v361_v56 }
  0x92   :  { %v75_v63 = vsel %vm73_vm4, %v366_v59, %v350_v44  ;;  %187 = vmatpush.msra.mxu2 %v61_v61  ;;  %v77_v3 = vsel %vm73_vm4, %v351_v43, %v365_v60  ;;  %v76_v5 = vsel %vm73_vm4, %v365_v60, %v366_v59 }
  0x93   :  { %166 = vmatpush.msra.mxu1 %v75_v63  ;;  %206 = vmatpush.msra.mxu3 %v77_v3 }
  0x94   :  { %146 = vmatpush.msra.mxu0 %v76_v5  ;;  %188 = vmatpush.msra.mxu2 %v48_v62 }
  0x96   :  { %v374_v7 = vpop.permute.xlu0 %373 }
  0x97   :  { %v376_v11 = vunpack.i.h.bf16 %v374_v7  ;;  %v375_v12 = vunpack.i.l.bf16 %v374_v7  ;;  %v379_v13 = vpop.permute.xlu1 %378 }
  0x98   :  { %v381_v14 = vunpack.i.h.bf16 %v379_v13  ;;  %v380_v15 = vunpack.i.l.bf16 %v379_v13 }
  0x99   :  { %v63_v16 = vsel %vm60_vm5, %v375_v12, %v376_v11  ;;  %v62_v17 = vsel %vm60_vm5, %v376_v11, %v360_v57  ;;  %v64_v18 = vsel %vm60_vm5, %v361_v56, %v375_v12  ;;  %v403_v57 = vmov 0  }
  0x9a   :  { %147 = vmatpush.msra.mxu0 %v63_v16  ;;  %167 = vmatpush.msra.mxu1 %v62_v17  ;;  %v35_v20 = vsel %vm34_vm7, %v380_v15, %v381_v14 }
  0x9b   :  { %207 = vmatpush.msra.mxu3 %v64_v18  ;;  %189 = vmatpush.msra.mxu2 %v35_v20 }
  0x9c   :  { %168 = vmatpush.msra.mxu1 %v49_v21  ;;  %148 = vmatpush.msra.mxu0 %v50_v19 }
  0x9d   :  { %208 = vmatpush.msra.mxu3 %v51_v23  ;;  %190 = vmatpush.msra.mxu2 %v437_v0  ;;  %v215_v0 = vld [vmem:[%s562_s4] sm:$0xf] }
  0x9e   :  { %v389_v24 = vpop.permute.xlu0 %388  ;;  %301 = vmatmul.msk.f32.vlgmr.msra.gmra.mxu2 %vm131_vm8, %v130_v22  ;;  %v217_v8 = vperm.slane %v215_v0, 0  ;;  %v218_v30 = vperm.slane %v215_v0, 1  ;;  %v219_v31 = vperm.slane %v215_v0, 2  ;;  %v220_v36 = vperm.slane %v215_v0, 3  ;;  %392 = vset.pattern.permute.xlu0 %v403_v57 }
  0x9f   :  { %v391_v25 = vunpack.i.h.bf16 %v389_v24  ;;  %v390_v26 = vunpack.i.l.bf16 %v389_v24 }
  0xa1   :  { %v37_v27 = vsel %vm34_vm7, %v390_v26, %v391_v25  ;;  %v36_v28 = vsel %vm34_vm7, %v391_v25, %v380_v15  ;;  %v38_v29 = vsel %vm34_vm7, %v381_v14, %v390_v26 }
  0xa2   :  { %149 = vmatpush.msra.mxu0 %v37_v27  ;;  %169 = vmatpush.msra.mxu1 %v36_v28 }
  0xa3   :  { %209 = vmatpush.msra.mxu3 %v38_v29 }
  0xa4   :  { %150 = vmatpush.msra.mxu0 %v447_v2  ;;  %170 = vmatpush.msra.mxu1 %v454_v4 }
  0xa5   :  { %210 = vmatpush.msra.mxu3 %v442_v1  ;;  %299 = vmatmul.msk.f32.vlgmr.msra.gmra.mxu0 %vm131_vm8, %v130_v22 }
  0xa6   :  { %302 = vmatmul.msk.f32.vlgmr.msra.gmra.mxu3 %vm131_vm8, %v130_v22  ;;  %300 = vmatmul.msk.f32.vlgmr.msra.gmra.mxu1 %vm131_vm8, %v130_v22 }
 0x121   :  { %v192_v32 = vpop.f32.mrf.mxu2 }
 0x122   :  { %v152_v33 = vpop.f32.mrf.mxu0  ;;  %v227_v35 = vmul.f32 %v219_v31, %v192_v32 }
 0x123   :  { %v225_v2 = vmul.f32 %v217_v8, %v152_v33  ;;  %v172_v34 = vpop.f32.mrf.mxu1 }
 0x124   :  { %v226_v4 = vmul.f32 %v218_v30, %v172_v34 }
 0x126   :  { %v229_v1 = vadd.f32 %v226_v4, %v225_v2 }
 0x128   :  { %v230_v37 = vadd.f32 %v229_v1, %v227_v35 }
 0x129   :  { %v212_v38 = vpop.f32.mrf.mxu3 }
 0x12a   :  { %v228_v39 = vmul.f32 %v220_v36, %v212_v38 }
 0x12c   :  { %v231_v40 = vadd.f32 %v230_v37, %v228_v39 }
 0x12e   :  { %232 = vadd.xlane.f32.xlu1 %v231_v40 }
 0x1a1   :  { %v233_v41 = vpop.xlane.xlu1 %232 }
 0x1a2   :  { %v234_v42 = vsub.f32 %v152_v33, %v233_v41  ;;  %v235_v43 = vsub.f32 %v172_v34, %v233_v41  ;;  %v236_v44 = vsub.f32 %v192_v32, %v233_v41  ;;  %v237_v45 = vsub.f32 %v212_v38, %v233_v41 }
 0x1a4   :  { %v238_v46 = vmul.f32 %v234_v42, %v234_v42  ;;  %v239_v47 = vmul.f32 %v235_v43, %v235_v43  ;;  %v240_v48 = vmul.f32 %v236_v44, %v236_v44  ;;  %v241_v49 = vmul.f32 %v237_v45, %v237_v45 }
 0x1a6   :  { %v242_v50 = vmul.f32 %v238_v46, %v217_v8  ;;  %v243_v51 = vmul.f32 %v239_v47, %v218_v30  ;;  %v244_v52 = vmul.f32 %v240_v48, %v219_v31  ;;  %v245_v54 = vmul.f32 %v241_v49, %v220_v36 }
 0x1a8   :  { %v246_v53 = vadd.f32 %v243_v51, %v242_v50 }
 0x1aa   :  { %v247_v55 = vadd.f32 %v246_v53, %v244_v52 }
 0x1ac   :  { %v248_v56 = vadd.f32 %v247_v55, %v245_v54 }
 0x1ae   :  { %249 = vadd.xlane.f32.xlu2 %v248_v56 }
 0x221   :  { %v250_v58 = vpop.xlane.xlu2 %249 }
 0x222   :  { %v252_v59 = vadd.f32 1e-05, %v250_v58 }
 0x224   :  { %393 = vrsqrt.f32 %v252_v59  ;;  %vm259_vm10 = vweird.f32 %v252_v59 }
 0x22a   :  { %v394_v60 = vpop.eup %393 }
 0x22b   :  { %v254_v61 = vmul.f32 %v394_v60, %v252_v59  ;;  %vm260_vm9 = vweird.f32 %v394_v60 }
 0x22c   :  { %vm261_vm11 = vmor %vm259_vm10, %vm260_vm9 }
 0x22d   :  { %v255_v62 = vmul.f32 %v394_v60, %v254_v61 }
 0x22f   :  { %v256_v63 = vmul.f32 0.5, %v255_v62 }
 0x231   :  { %v257_v3 = vsub.f32 1.5, %v256_v63 }
 0x233   :  { %v258_v5 = vmul.f32 %v394_v60, %v257_v3 }
 0x235   :  { %v262_v7 = vsel %vm261_vm11, %v394_v60, %v258_v5 }
 0x236   :  { %v263_v9 = vmul.f32 %v262_v7, %v251_v6 }
 0x238   :  { %266 = vperm.xlu0 %392, %v263_v9  }
 0x240   :  { %276 = vperm.xlu0 %392, %v273_v10  }
 0x2aa   :  { %v267_v11 = vpop.permute.xlu0 %266 }
 0x2ab   :  { %v269_v12 = vmul.f32 %v267_v11, %v234_v42  ;;  %v270_v13 = vmul.f32 %v267_v11, %v235_v43  ;;  %v271_v14 = vmul.f32 %v267_v11, %v236_v44  ;;  %v272_v15 = vmul.f32 %v267_v11, %v237_v45 }
 0x2b2   :  { %v277_v16 = vpop.permute.xlu0 %276 }
 0x2b3   :  { %v279_v17 = vadd.f32 %v277_v16, %v269_v12  ;;  %v280_v18 = vadd.f32 %v277_v16, %v270_v13  ;;  %v281_v19 = vadd.f32 %v277_v16, %v271_v14  ;;  %v282_v20 = vadd.f32 %v277_v16, %v272_v15 }
 0x2b5   :  { %v283_v21 = vmul.f32 0.2, %v279_v17  ;;  %v284_v22 = vmul.f32 0.2, %v280_v18  ;;  %v285_v23 = vmul.f32 0.2, %v281_v19 }
 0x2b6   :  { %v286_v24 = vmul.f32 0.2, %v282_v20 }
 0x2b7   :  { %v287_v25 = vmax.f32 %v279_v17, %v283_v21  ;;  %v288_v26 = vmax.f32 %v280_v18, %v284_v22  ;;  %v289_v27 = vmax.f32 %v281_v19, %v285_v23 }
 0x2b8   :  { %v290_v28 = vmax.f32 %v282_v20, %v286_v24 }
 0x2b9   :  { %291 = vst [vmem:[%s565_s5] sm:$0xff] %v287_v25 }
 0x2ba   :  { %292 = vst [vmem:[%s565_s5 + $0x8] sm:$0xff] %v288_v26 }
 0x2bb   :  { %293 = vst [vmem:[%s565_s5 + $0x10] sm:$0xff] %v289_v27 }
 0x2bc   :  { %294 = vst [vmem:[%s565_s5 + $0x18] sm:$0xff] %v290_v28 }

</bundles_post_ra>
